<compile_context>
chip_gen: v5e
topology: v5e:2x2
jax: 0.10.0
libtpu: 0.0.40
codegen_flags: <defaults>
</compile_context>

<pallas_src>
import functools
import math

import jax
import jax.numpy as jnp
from jax import lax
from jax.experimental import pallas as pl
from jax.experimental.pallas import tpu as pltpu


def _saf_kernel(text_ref, image_ref, w_in_ref, b_in_ref, w_out_ref, affine_ref,
                out_ref, *, dim, eps):
    D = dim
    w_in = w_in_ref[...]                                   # (D, 3D), Q cols pre-scaled
    b_in = b_in_ref[...]                                   # (1, 3D), Q slice pre-scaled

    # Two fused QKV projections (one per sequence position) -> no concat, no sublane
    # slicing across the text/image boundary.
    qkv0 = jnp.dot(text_ref[...], w_in, preferred_element_type=jnp.float32) + b_in
    qkv1 = jnp.dot(image_ref[...], w_in, preferred_element_type=jnp.float32) + b_in

    q0, k0, v0 = qkv0[:, 0:D], qkv0[:, D:2 * D], qkv0[:, 2 * D:3 * D]   # (B, D) each
    q1, k1, v1 = qkv1[:, 0:D], qkv1[:, D:2 * D], qkv1[:, 2 * D:3 * D]

    # 2x2 attention scores per batch row (lane reductions on the XLU).
    s00 = jnp.sum(q0 * k0, axis=-1, keepdims=True)         # (B, 1)
    s01 = jnp.sum(q0 * k1, axis=-1, keepdims=True)
    s10 = jnp.sum(q1 * k0, axis=-1, keepdims=True)
    s11 = jnp.sum(q1 * k1, axis=-1, keepdims=True)

    # Softmax over the length-2 key axis, per query row (exact divide to preserve
    # the 1e-4 reference tolerance).
    m0 = jnp.maximum(s00, s01)
    e00 = jnp.exp(s00 - m0)
    e01 = jnp.exp(s01 - m0)
    inv0 = 1.0 / (e00 + e01)
    m1 = jnp.maximum(s10, s11)
    e10 = jnp.exp(s10 - m1)
    e11 = jnp.exp(s11 - m1)
    inv1 = 1.0 / (e10 + e11)

    # sum(dim=0) over the sequence folded in BEFORE the output projection:
    #   sum_s(out_s @ Wo^T + bo) == (out0 + out1) @ Wo^T + 2*bo
    # (2*bo is pre-folded into affine_ref row 0).
    w_v0 = e00 * inv0 + e10 * inv1                          # (B, 1)  = a00 + a10
    w_v1 = e01 * inv0 + e11 * inv1                          #          = a01 + a11
    ctx = w_v0 * v0 + w_v1 * v1                             # (B, D)

    combined = (jnp.dot(ctx, w_out_ref[...], preferred_element_type=jnp.float32)
                + affine_ref[0:1, :])                       # (B, D), +2*b_out

    # BatchNorm1d, training-mode batch statistics (biased variance), as in a direct
    # forward call of the module.
    mean = jnp.mean(combined, axis=0, keepdims=True)        # (1, D)
    cen = combined - mean
    var = jnp.mean(cen * cen, axis=0, keepdims=True)
    inv_std = lax.rsqrt(var + eps)
    out_ref[...] = affine_ref[1:2, :] * (cen * inv_std) + affine_ref[2:3, :]


def prepare_params(w_in, b_in, w_out, b_out, gamma, beta):
    """One-time weight re-layout + constant folding (outside the call, not per forward):
      * weights -> (in, out) so the kernel computes x @ W + b,
      * Q columns of W_in / Q slice of b_in pre-scaled by 1/sqrt(D),
      * b_out pre-doubled and packed with gamma/beta into one (3, D) operand.
    """
    w_in = jnp.asarray(w_in)                 # (3D, D) torch in_proj_weight layout
    D = w_in.shape[1]
    scale = 1.0 / math.sqrt(D)

    w_in_t = w_in.T                          # (D, 3D)
    w_in_t = w_in_t.at[:, 0:D].multiply(scale)
    b_in_r = jnp.asarray(b_in)[None, :]      # (1, 3D)
    b_in_r = b_in_r.at[:, 0:D].multiply(scale)

    w_out_t = jnp.asarray(w_out).T           # (D, D)
    affine = jnp.stack([2.0 * jnp.asarray(b_out),
                        jnp.asarray(gamma),
                        jnp.asarray(beta)], axis=0)          # (3, D)
    return w_in_t, b_in_r, w_out_t, affine


def self_attention_fusion(text, image, prepared_params, *, eps=1e-5):
    """text, image: (B, D) float32. Returns (B, D) float32."""
    B, D = text.shape
    w_in_t, b_in_r, w_out_t, affine = prepared_params

    vmem = lambda: pl.BlockSpec(memory_space=pltpu.MemorySpace.VMEM)
    kernel = functools.partial(_saf_kernel, dim=D, eps=eps)
    return pl.pallas_call(
        kernel,
        out_shape=jax.ShapeDtypeStruct((B, D), jnp.float32),
        in_specs=[vmem() for _ in range(6)],
        out_specs=vmem(),
    )(text, image, w_in_t, b_in_r, w_out_t, affine)


def saf_reference(text, image, params, *, eps=1e-5):
    """Pure-JAX reference mirroring the PyTorch SelfAttentionFusion forward."""
    w_in, b_in, w_out, b_out, gamma, beta = params
    D = text.shape[-1]
    feats = jnp.stack([text, image], axis=0)               # (2, B, D)  (seq, batch, embed)
    qkv = jnp.einsum('sbd,ed->sbe', feats, w_in) + b_in    # (2, B, 3D)
    q, k, v = qkv[..., :D], qkv[..., D:2 * D], qkv[..., 2 * D:]
    q = q / jnp.sqrt(jnp.float32(D))
    scores = jnp.einsum('sbd,tbd->bst', q, k)              # (B, 2, 2)
    attn = jax.nn.softmax(scores, axis=-1)
    out = jnp.einsum('bst,tbd->sbd', attn, v)              # (2, B, D)
    attended = jnp.einsum('sbd,ed->sbe', out, w_out) + b_out
    combined = attended.sum(axis=0)                        # (B, D)
    mean = combined.mean(axis=0, keepdims=True)
    var = ((combined - mean) ** 2).mean(axis=0, keepdims=True)
    return gamma * (combined - mean) / jnp.sqrt(var + eps) + beta


if __name__ == "__main__":
    B, D = 8, 128                                           # batch, feature_dim (lane-dense)
    key = jax.random.PRNGKey(0)
    k_text, k_img, k_win, k_bin, k_wo, k_bo, k_g, k_b = jax.random.split(key, 8)

    text = jax.random.normal(k_text, (B, D), jnp.float32)
    image = jax.random.normal(k_img, (B, D), jnp.float32)

    bound = 1.0 / math.sqrt(D)
    w_in = jax.random.uniform(k_win, (3 * D, D), jnp.float32, -bound, bound)   # in_proj_weight
    b_in = jax.random.uniform(k_bin, (3 * D,), jnp.float32, -bound, bound)     # in_proj_bias
    w_out = jax.random.uniform(k_wo, (D, D), jnp.float32, -bound, bound)       # out_proj.weight
    b_out = jax.random.uniform(k_bo, (D,), jnp.float32, -bound, bound)         # out_proj.bias
    gamma = jax.random.uniform(k_g, (D,), jnp.float32, 0.5, 1.5)               # bn.weight
    beta = jax.random.uniform(k_b, (D,), jnp.float32, -0.5, 0.5)               # bn.bias

    prepared = prepare_params(w_in, b_in, w_out, b_out, gamma, beta)
    out = self_attention_fusion(text, image, prepared)
    out = jax.block_until_ready(out)

    ref = saf_reference(text, image, (w_in, b_in, w_out, b_out, gamma, beta))
    assert out.shape == (B, D)
    max_err = jnp.max(jnp.abs(out - ref))
    assert jnp.allclose(out, ref, atol=1e-4, rtol=1e-4), f"mismatch vs reference (max abs err {max_err})"

    # TODO(synk): eval-mode BatchNorm1d (running-stats) is not modeled; kernel matches
    # the module's default training-mode forward (batch statistics).
    print("KERNEL_OK")
</pallas_src>

<mosaic_0001>
module attributes {stable_mosaic.version = 11 : i64} {
  func.func @_saf_kernel(%arg0: memref<8x128xf32, #tpu.memory_space<vmem>>, %arg1: memref<8x128xf32, #tpu.memory_space<vmem>>, %arg2: memref<128x384xf32, #tpu.memory_space<vmem>>, %arg3: memref<1x384xf32, #tpu.memory_space<vmem>>, %arg4: memref<128x128xf32, #tpu.memory_space<vmem>>, %arg5: memref<3x128xf32, #tpu.memory_space<vmem>>, %arg6: memref<8x128xf32, #tpu.memory_space<vmem>>) attributes {dimension_semantics = [], scalar_prefetch = 0 : i64, scratch_operands = 0 : i64, tpu.core_type = #tpu.core_type<tc>} {
    %c0 = arith.constant 0 : index
    %c0_0 = arith.constant 0 : index
    %0 = vector.load %arg2[%c0, %c0_0] : memref<128x384xf32, #tpu.memory_space<vmem>>, vector<128x384xf32>
    %c0_1 = arith.constant 0 : index
    %c0_2 = arith.constant 0 : index
    %1 = vector.load %arg3[%c0_1, %c0_2] : memref<1x384xf32, #tpu.memory_space<vmem>>, vector<1x384xf32>
    %c0_3 = arith.constant 0 : index
    %c0_4 = arith.constant 0 : index
    %2 = vector.load %arg0[%c0_3, %c0_4] : memref<8x128xf32, #tpu.memory_space<vmem>>, vector<8x128xf32>
    %cst = arith.constant dense<0.000000e+00> : vector<8x384xf32>
    %3 = tpu.matmul %2, %0, %cst {dimension_numbers = #tpu.dot_dimension_numbers<[1], [0], [0], [1], [0, 0, 1, 1], [], []>} : vector<8x128xf32>, vector<128x384xf32>, vector<8x384xf32> -> vector<8x384xf32>
    %4 = vector.broadcast %1 : vector<1x384xf32> to vector<8x384xf32>
    %5 = arith.addf %3, %4 : vector<8x384xf32>
    %c0_5 = arith.constant 0 : index
    %c0_6 = arith.constant 0 : index
    %6 = vector.load %arg1[%c0_5, %c0_6] : memref<8x128xf32, #tpu.memory_space<vmem>>, vector<8x128xf32>
    %cst_7 = arith.constant dense<0.000000e+00> : vector<8x384xf32>
    %7 = tpu.matmul %6, %0, %cst_7 {dimension_numbers = #tpu.dot_dimension_numbers<[1], [0], [0], [1], [0, 0, 1, 1], [], []>} : vector<8x128xf32>, vector<128x384xf32>, vector<8x384xf32> -> vector<8x384xf32>
    %8 = vector.broadcast %1 : vector<1x384xf32> to vector<8x384xf32>
    %9 = arith.addf %7, %8 : vector<8x384xf32>
    %10 = vector.extract_strided_slice %5 {offsets = [0, 0], sizes = [8, 128], strides = [1, 1]} : vector<8x384xf32> to vector<8x128xf32>
    %11 = vector.extract_strided_slice %5 {offsets = [0, 128], sizes = [8, 128], strides = [1, 1]} : vector<8x384xf32> to vector<8x128xf32>
    %12 = vector.extract_strided_slice %5 {offsets = [0, 256], sizes = [8, 128], strides = [1, 1]} : vector<8x384xf32> to vector<8x128xf32>
    %13 = vector.extract_strided_slice %9 {offsets = [0, 0], sizes = [8, 128], strides = [1, 1]} : vector<8x384xf32> to vector<8x128xf32>
    %14 = vector.extract_strided_slice %9 {offsets = [0, 128], sizes = [8, 128], strides = [1, 1]} : vector<8x384xf32> to vector<8x128xf32>
    %15 = vector.extract_strided_slice %9 {offsets = [0, 256], sizes = [8, 128], strides = [1, 1]} : vector<8x384xf32> to vector<8x128xf32>
    %16 = arith.mulf %10, %11 : vector<8x128xf32>
    %cst_8 = arith.constant dense<0.000000e+00> : vector<8xf32>
    %17 = vector.multi_reduction <add>, %16, %cst_8 [1] : vector<8x128xf32> to vector<8xf32>
    %18 = vector.shape_cast %17 : vector<8xf32> to vector<8x1xf32>
    %19 = arith.mulf %10, %14 : vector<8x128xf32>
    %cst_9 = arith.constant dense<0.000000e+00> : vector<8xf32>
    %20 = vector.multi_reduction <add>, %19, %cst_9 [1] : vector<8x128xf32> to vector<8xf32>
    %21 = vector.shape_cast %20 : vector<8xf32> to vector<8x1xf32>
    %22 = arith.mulf %13, %11 : vector<8x128xf32>
    %cst_10 = arith.constant dense<0.000000e+00> : vector<8xf32>
    %23 = vector.multi_reduction <add>, %22, %cst_10 [1] : vector<8x128xf32> to vector<8xf32>
    %24 = vector.shape_cast %23 : vector<8xf32> to vector<8x1xf32>
    %25 = arith.mulf %13, %14 : vector<8x128xf32>
    %cst_11 = arith.constant dense<0.000000e+00> : vector<8xf32>
    %26 = vector.multi_reduction <add>, %25, %cst_11 [1] : vector<8x128xf32> to vector<8xf32>
    %27 = vector.shape_cast %26 : vector<8xf32> to vector<8x1xf32>
    %28 = arith.maximumf %18, %21 : vector<8x1xf32>
    %29 = arith.subf %18, %28 : vector<8x1xf32>
    %30 = math.exp %29 : vector<8x1xf32>
    %31 = arith.subf %21, %28 : vector<8x1xf32>
    %32 = math.exp %31 : vector<8x1xf32>
    %33 = arith.addf %30, %32 : vector<8x1xf32>
    %cst_12 = arith.constant 1.000000e+00 : f32
    %34 = vector.broadcast %cst_12 : f32 to vector<8x1xf32>
    %35 = arith.divf %34, %33 : vector<8x1xf32>
    %36 = arith.maximumf %24, %27 : vector<8x1xf32>
    %37 = arith.subf %24, %36 : vector<8x1xf32>
    %38 = math.exp %37 : vector<8x1xf32>
    %39 = arith.subf %27, %36 : vector<8x1xf32>
    %40 = math.exp %39 : vector<8x1xf32>
    %41 = arith.addf %38, %40 : vector<8x1xf32>
    %cst_13 = arith.constant 1.000000e+00 : f32
    %42 = vector.broadcast %cst_13 : f32 to vector<8x1xf32>
    %43 = arith.divf %42, %41 : vector<8x1xf32>
    %44 = arith.mulf %30, %35 : vector<8x1xf32>
    %45 = arith.mulf %38, %43 : vector<8x1xf32>
    %46 = arith.addf %44, %45 : vector<8x1xf32>
    %47 = arith.mulf %32, %35 : vector<8x1xf32>
    %48 = arith.mulf %40, %43 : vector<8x1xf32>
    %49 = arith.addf %47, %48 : vector<8x1xf32>
    %50 = vector.broadcast %46 : vector<8x1xf32> to vector<8x128xf32>
    %51 = arith.mulf %50, %12 : vector<8x128xf32>
    %52 = vector.broadcast %49 : vector<8x1xf32> to vector<8x128xf32>
    %53 = arith.mulf %52, %15 : vector<8x128xf32>
    %54 = arith.addf %51, %53 : vector<8x128xf32>
    %c0_14 = arith.constant 0 : index
    %c0_15 = arith.constant 0 : index
    %55 = vector.load %arg4[%c0_14, %c0_15] : memref<128x128xf32, #tpu.memory_space<vmem>>, vector<128x128xf32>
    %cst_16 = arith.constant dense<0.000000e+00> : vector<8x128xf32>
    %56 = tpu.matmul %54, %55, %cst_16 {dimension_numbers = #tpu.dot_dimension_numbers<[1], [0], [0], [1], [0, 0, 1, 1], [], []>} : vector<8x128xf32>, vector<128x128xf32>, vector<8x128xf32> -> vector<8x128xf32>
    %c0_17 = arith.constant 0 : index
    %c0_18 = arith.constant 0 : index
    %57 = vector.load %arg5[%c0_17, %c0_18] : memref<3x128xf32, #tpu.memory_space<vmem>>, vector<1x128xf32>
    %58 = vector.broadcast %57 : vector<1x128xf32> to vector<8x128xf32>
    %59 = arith.addf %56, %58 : vector<8x128xf32>
    %cst_19 = arith.constant dense<0.000000e+00> : vector<128xf32>
    %60 = vector.multi_reduction <add>, %59, %cst_19 [0] : vector<8x128xf32> to vector<128xf32>
    %61 = vector.shape_cast %60 : vector<128xf32> to vector<1x128xf32>
    %cst_20 = arith.constant 8.000000e+00 : f32
    %62 = vector.broadcast %cst_20 : f32 to vector<1x128xf32>
    %63 = arith.divf %61, %62 : vector<1x128xf32>
    %64 = vector.broadcast %63 : vector<1x128xf32> to vector<8x128xf32>
    %65 = arith.subf %59, %64 : vector<8x128xf32>
    %66 = arith.mulf %65, %65 : vector<8x128xf32>
    %cst_21 = arith.constant dense<0.000000e+00> : vector<128xf32>
    %67 = vector.multi_reduction <add>, %66, %cst_21 [0] : vector<8x128xf32> to vector<128xf32>
    %68 = vector.shape_cast %67 : vector<128xf32> to vector<1x128xf32>
    %cst_22 = arith.constant 8.000000e+00 : f32
    %69 = vector.broadcast %cst_22 : f32 to vector<1x128xf32>
    %70 = arith.divf %68, %69 : vector<1x128xf32>
    %cst_23 = arith.constant 9.99999974E-6 : f32
    %71 = vector.broadcast %cst_23 : f32 to vector<1x128xf32>
    %72 = arith.addf %70, %71 : vector<1x128xf32>
    %73 = math.rsqrt %72 : vector<1x128xf32>
    %c1 = arith.constant 1 : index
    %c0_24 = arith.constant 0 : index
    %74 = vector.load %arg5[%c1, %c0_24] : memref<3x128xf32, #tpu.memory_space<vmem>>, vector<1x128xf32>
    %75 = vector.broadcast %73 : vector<1x128xf32> to vector<8x128xf32>
    %76 = arith.mulf %65, %75 : vector<8x128xf32>
    %77 = vector.broadcast %74 : vector<1x128xf32> to vector<8x128xf32>
    %78 = arith.mulf %77, %76 : vector<8x128xf32>
    %c2 = arith.constant 2 : index
    %c0_25 = arith.constant 0 : index
    %79 = vector.load %arg5[%c2, %c0_25] : memref<3x128xf32, #tpu.memory_space<vmem>>, vector<1x128xf32>
    %80 = vector.broadcast %79 : vector<1x128xf32> to vector<8x128xf32>
    %81 = arith.addf %78, %80 : vector<8x128xf32>
    %c0_26 = arith.constant 0 : index
    %c0_27 = arith.constant 0 : index
    %82 = vector.load %arg6[%c0_26, %c0_27] : memref<8x128xf32, #tpu.memory_space<vmem>>, vector<8x128xf32>
    tpu.vector_store %arg6[%c0_26, %c0_27], %81 {strides = array<i32>} : memref<8x128xf32, #tpu.memory_space<vmem>>, vector<8x128xf32>,
    return
  }
}

</mosaic_0001>

<bundles_post_ra>
// kernel: tpu_custom_call.1
= control target key start
LH: loop header
LB: loop body
LE: loop exit
PB: predicated region body
PF: predicated region fallthrough
CT: control target
= control target key end

     0   :  { %11 = vsyncpa [#allocation3], 0  ;;  %s726_s0 = inlined_call_operand.hbm [shape: f32[8,128], index: 0, kind: input, shape index: {}]   ;;  %s727_s1 = inlined_call_operand.hbm [shape: f32[8,128], index: 1, kind: input, shape index: {}]   ;;  %s728_s2 = inlined_call_operand.hbm [shape: f32[128,384], index: 2, kind: input, shape index: {}]   ;;  %s729_s3 = inlined_call_operand.hbm [shape: f32[1,384], index: 3, kind: input, shape index: {}]   ;;  %s730_s4 = inlined_call_operand.hbm [shape: f32[128,128], index: 4, kind: input, shape index: {}]   ;;  %s731_s5 = inlined_call_operand.vmem [shape: f32[3,128], index: 5, kind: input, shape index: {}]   ;;  %s732_s6 = inlined_call_operand.hbm [shape: f32[8,128], index: 6, kind: output, shape index: {}]  }
   0x1   :  { %12 = vsyncpa [#allocation6], 0 }
   0x2   :  { %13 = vsyncpa [#allocation9], 0  ;;  %s31_s23 = sshll.u32 %s727_s1, 4  ;;  %s32_s23 = int_to_ptr.hbm [resolvable:$true] %s31_s23 }
   0x3   :  { %14 = vsyncpa [#allocation4], 0  ;;  %s622_s24 = smov [#allocation5]   ;;  %s55_s28 = sshll.u32 %s729_s3, 4  ;;  %s56_s28 = int_to_ptr.hbm [resolvable:$true] %s55_s28 }
   0x4   :  { %s33_s25 = sshll.u32 %s622_s24, 4  ;;  %s623_s29 = smov [#allocation8]   ;;  %s34_s25 = int_to_ptr.vmem [resolvable:$true] %s33_s25 }
   0x5   :  { %36 = dma.hbm_to_vmem [thread:$0]  %s32_s23, 128, %s34_s25, [#allocation6]  }
   0x6   :  { %s57_s30 = sshll.u32 %s623_s29, 4  ;;  %s20_s9 = sshll.u32 %s726_s0, 4  ;;  %s58_s30 = int_to_ptr.vmem [resolvable:$true] %s57_s30  ;;  %s21_s9 = int_to_ptr.hbm [resolvable:$true] %s20_s9 }
   0x7   :  { %60 = dma.hbm_to_vmem [thread:$0]  %s56_s28, 48, %s58_s30, [#allocation9]  }
   0x8   :  { %s41_s11 = sshll.u32 %s728_s2, 4  ;;  %s624_s12 = smov [#allocation2]   ;;  %s42_s11 = int_to_ptr.hbm [resolvable:$true] %s41_s11 }
   0x9   :  { %s22_s13 = sshll.u32 %s624_s12, 4  ;;  %s625_s3 = smov [#allocation7]   ;;  %s23_s13 = int_to_ptr.vmem [resolvable:$true] %s22_s13 }
   0xa   :  { %25 = dma.hbm_to_vmem [thread:$0]  %s21_s9, 128, %s23_s13, [#allocation3]  }
   0xb   :  { %s43_s14 = sshll.u32 %s625_s3, 4  ;;  %s626_s15 = smov 384   ;;  %s44_s14 = int_to_ptr.vmem [resolvable:$true] %s43_s14 }
   0xc   :  { %s627_s16 = smov 24   ;;  %s65_s18 = sshll.u32 %s730_s4, 4  ;;  %s66_s18 = int_to_ptr.hbm [resolvable:$true] %s65_s18 }
   0xd   :  { %49 = dma.hbm_to_vmem [thread:$0]  %s42_s11, 6144, %s44_s14, [#allocation6], %s626_s15, %s626_s15, %s627_s16  }
   0xe   :  { %s628_s19 = smov [#allocation10]   ;;  %s629_s2 = smov 128  }
   0xf   :  { %s67_s20 = sshll.u32 %s628_s19, 4  ;;  %s630_s21 = smov 8   ;;  %s68_s20 = int_to_ptr.vmem [resolvable:$true] %s67_s20 }
  0x10   :  { %73 = dma.hbm_to_vmem [thread:$0]  %s66_s18, 2048, %s68_s20, [#allocation9], %s629_s2, %s629_s2, %s630_s21  }
  0x11   :  { %614 = dma.done.wait [#allocation3], 128  }
  0x12   :  { %615 = vsyncadd [#allocation3], 4294967168 }
  0x13   :  { %616 = dma.done.wait [#allocation6], 6272  }
  0x14   :  { %617 = vsyncadd [#allocation6], 4294961024 }
  0x15   :  { %618 = dma.done.wait [#allocation9], 2096  }
  0x16   :  { %619 = vsyncadd [#allocation9], 4294965200  ;;  %v141_v0 = vld [vmem:[#allocation7 + $0x168] sm:$0xff]  ;;  %v138_v1 = vld [vmem:[#allocation7 + $0x150] sm:$0xff]  ;;  %s632_s27 = smov [#allocation11]   ;;  %s428_s7 = sshll.u32 %s732_s6, 4  ;;  %s429_s7 = int_to_ptr.hbm [resolvable:$true] %s428_s7 }
  0x17   :  { %153 = vmatpush.msra.mxu0 %v141_v0  ;;  %214 = vmatpush.msra.mxu3 %v141_v0  ;;  %v135_v2 = vld [vmem:[#allocation7 + $0x138] sm:$0xff]  ;;  %v132_v3 = vld [vmem:[#allocation7 + $0x120] sm:$0xff]  ;;  %v683_v4 = vld [vmem:[#allocation7 + $0x170] sm:$0xff]  ;;  %s426_s28 = sshll.u32 %s632_s27, 4  ;;  %s427_s28 = int_to_ptr.vmem [resolvable:$true] %s426_s28 }
  0x18   :  { %v685_v5 = vld [vmem:[#allocation7 + $0x158] sm:$0xff]  ;;  %v129_v6 = vld [vmem:[#allocation7 + $0x108] sm:$0xff]  ;;  %173 = vmatpush.msra.mxu1 %v683_v4  ;;  %v688_v7 = vld [vmem:[#allocation7 + $0x140] sm:$0xff] }
  0x19   :  { %154 = vmatpush.msra.mxu0 %v138_v1  ;;  %215 = vmatpush.msra.mxu3 %v138_v1  ;;  %v126_v8 = vld [vmem:[#allocation7 + $0xf0] sm:$0xff]  ;;  %v691_v9 = vld [vmem:[#allocation7 + $0x128] sm:$0xff]  ;;  %v123_v10 = vld [vmem:[#allocation7 + $0xd8] sm:$0xff] }
  0x1a   :  { %174 = vmatpush.msra.mxu1 %v685_v5  ;;  %v130_v11 = vld [vmem:[#allocation7 + $0x110] sm:$0xff]  ;;  %v120_v12 = vld [vmem:[#allocation7 + $0xc0] sm:$0xff]  ;;  %v127_v13 = vld [vmem:[#allocation7 + $0xf8] sm:$0xff] }
  0x1b   :  { %155 = vmatpush.msra.mxu0 %v135_v2  ;;  %216 = vmatpush.msra.mxu3 %v135_v2  ;;  %v117_v14 = vld [vmem:[#allocation7 + $0xa8] sm:$0xff]  ;;  %v124_v15 = vld [vmem:[#allocation7 + $0xe0] sm:$0xff]  ;;  %v114_v16 = vld [vmem:[#allocation7 + $0x90] sm:$0xff] }
  0x1c   :  { %175 = vmatpush.msra.mxu1 %v688_v7  ;;  %v121_v17 = vld [vmem:[#allocation7 + $0xc8] sm:$0xff]  ;;  %v111_v18 = vld [vmem:[#allocation7 + $0x78] sm:$0xff]  ;;  %v118_v19 = vld [vmem:[#allocation7 + $0xb0] sm:$0xff] }
  0x1d   :  { %156 = vmatpush.msra.mxu0 %v132_v3  ;;  %217 = vmatpush.msra.mxu3 %v132_v3  ;;  %v108_v20 = vld [vmem:[#allocation7 + $0x60] sm:$0xff]  ;;  %v115_v21 = vld [vmem:[#allocation7 + $0x98] sm:$0xff]  ;;  %v105_v22 = vld [vmem:[#allocation7 + $0x48] sm:$0xff] }
  0x1e   :  { %176 = vmatpush.msra.mxu1 %v691_v9  ;;  %v112_v23 = vld [vmem:[#allocation7 + $0x80] sm:$0xff]  ;;  %v102_v24 = vld [vmem:[#allocation7 + $0x30] sm:$0xff]  ;;  %v109_v25 = vld [vmem:[#allocation7 + $0x68] sm:$0xff] }
  0x1f   :  { %157 = vmatpush.msra.mxu0 %v129_v6  ;;  %218 = vmatpush.msra.mxu3 %v129_v6  ;;  %v99_v26 = vld [vmem:[#allocation7 + $0x18] sm:$0xff]  ;;  %v106_v27 = vld [vmem:[#allocation7 + $0x50] sm:$0xff]  ;;  %v96_v28 = vld [vmem:[#allocation7] sm:$0xff] }
  0x20   :  { %177 = vmatpush.msra.mxu1 %v130_v11  ;;  %v695_v29 = vld [vmem:[#allocation5] sm:$0xff]  ;;  %v697_v31 = vld [vmem:[#allocation2] sm:$0xff]  ;;  %v100_v32 = vld [vmem:[#allocation7 + $0x20] sm:$0xff] }
  0x21   :  { %158 = vmatpush.msra.mxu0 %v126_v8  ;;  %219 = vmatpush.msra.mxu3 %v126_v8  ;;  %v103_v30 = vld [vmem:[#allocation7 + $0x38] sm:$0xff]  ;;  %v97_v33 = vld [vmem:[#allocation7 + $0x8] sm:$0xff]  ;;  %v140_v35 = vld [vmem:[#allocation7 + $0x160] sm:$0xff] }
  0x22   :  { %178 = vmatpush.msra.mxu1 %v127_v13  ;;  %v143_v34 = vld [vmem:[#allocation7 + $0x178] sm:$0xff]  ;;  %v137_v36 = vld [vmem:[#allocation7 + $0x148] sm:$0xff]  ;;  %v134_v37 = vld [vmem:[#allocation7 + $0x130] sm:$0xff] }
  0x23   :  { %159 = vmatpush.msra.mxu0 %v123_v10  ;;  %220 = vmatpush.msra.mxu3 %v123_v10  ;;  %v131_v38 = vld [vmem:[#allocation7 + $0x118] sm:$0xff]  ;;  %v707_v39 = vld [vmem:[#allocation8] sm:$0x7]  ;;  %v125_v41 = vld [vmem:[#allocation7 + $0xe8] sm:$0xff] }
  0x24   :  { %179 = vmatpush.msra.mxu1 %v124_v15  ;;  %193 = vmatpush.msra.mxu2 %v143_v34  ;;  %v128_v40 = vld [vmem:[#allocation7 + $0x100] sm:$0xff]  ;;  %v147_v42 = vperm.slane %v707_v39, 0  ;;  %v148_v44 = vperm.slane %v707_v39, 1  ;;  %v122_v45 = vld [vmem:[#allocation7 + $0xd0] sm:$0xff]  ;;  %v119_v46 = vld [vmem:[#allocation7 + $0xb8] sm:$0xff] }
  0x25   :  { %160 = vmatpush.msra.mxu0 %v120_v12  ;;  %221 = vmatpush.msra.mxu3 %v120_v12  ;;  %v116_v50 = vld [vmem:[#allocation7 + $0xa0] sm:$0xff]  ;;  %v113_v55 = vld [vmem:[#allocation7 + $0x88] sm:$0xff]  ;;  %v110_v56 = vld [vmem:[#allocation7 + $0x70] sm:$0xff] }
  0x26   :  { %180 = vmatpush.msra.mxu1 %v121_v17  ;;  %194 = vmatpush.msra.mxu2 %v140_v35  ;;  %v107_v57 = vld [vmem:[#allocation7 + $0x58] sm:$0xff]  ;;  %v104_v58 = vld [vmem:[#allocation7 + $0x40] sm:$0xff]  ;;  %v101_v59 = vld [vmem:[#allocation7 + $0x28] sm:$0xff] }
  0x27   :  { %161 = vmatpush.msra.mxu0 %v117_v14  ;;  %222 = vmatpush.msra.mxu3 %v117_v14  ;;  %v98_v60 = vld [vmem:[#allocation7 + $0x10] sm:$0xff]  ;;  %v356_v1 = vld [vmem:[#allocation10 + $0x78] sm:$0xff]  ;;  %v349_v10 = vld [vmem:[#allocation10 + $0x40] sm:$0xff] }
  0x28   :  { %181 = vmatpush.msra.mxu1 %v118_v19  ;;  %195 = vmatpush.msra.mxu2 %v137_v36  ;;  %v355_v2 = vld [vmem:[#allocation10 + $0x70] sm:$0xff]  ;;  %v354_v3 = vld [vmem:[#allocation10 + $0x68] sm:$0xff] }
  0x29   :  { %162 = vmatpush.msra.mxu0 %v114_v16  ;;  %223 = vmatpush.msra.mxu3 %v114_v16  ;;  %v351_v6 = vld [vmem:[#allocation10 + $0x50] sm:$0xff]  ;;  %v345_v16 = vld [vmem:[#allocation10 + $0x20] sm:$0xff] }
  0x2a   :  { %182 = vmatpush.msra.mxu1 %v115_v21  ;;  %196 = vmatpush.msra.mxu2 %v134_v37  ;;  %v347_v12 = vld [vmem:[#allocation10 + $0x30] sm:$0xff] }
  0x2b   :  { %163 = vmatpush.msra.mxu0 %v111_v18  ;;  %224 = vmatpush.msra.mxu3 %v111_v18 }
  0x2c   :  { %183 = vmatpush.msra.mxu1 %v112_v23  ;;  %197 = vmatpush.msra.mxu2 %v131_v38 }
  0x2d   :  { %164 = vmatpush.msra.mxu0 %v108_v20  ;;  %225 = vmatpush.msra.mxu3 %v108_v20 }
  0x2e   :  { %184 = vmatpush.msra.mxu1 %v109_v25  ;;  %198 = vmatpush.msra.mxu2 %v128_v40 }
  0x2f   :  { %165 = vmatpush.msra.mxu0 %v105_v22  ;;  %226 = vmatpush.msra.mxu3 %v105_v22 }
  0x30   :  { %185 = vmatpush.msra.mxu1 %v106_v27  ;;  %199 = vmatpush.msra.mxu2 %v125_v41 }
  0x31   :  { %166 = vmatpush.msra.mxu0 %v102_v24  ;;  %227 = vmatpush.msra.mxu3 %v102_v24 }
  0x32   :  { %186 = vmatpush.msra.mxu1 %v103_v30  ;;  %200 = vmatpush.msra.mxu2 %v122_v45 }
  0x33   :  { %167 = vmatpush.msra.mxu0 %v99_v26  ;;  %228 = vmatpush.msra.mxu3 %v99_v26 }
  0x34   :  { %187 = vmatpush.msra.mxu1 %v100_v32  ;;  %201 = vmatpush.msra.mxu2 %v119_v46 }
  0x35   :  { %168 = vmatpush.msra.mxu0 %v96_v28  ;;  %229 = vmatpush.msra.mxu3 %v96_v28  ;;  %v343_v28 = vld [vmem:[#allocation10 + $0x10] sm:$0xff] }
  0x36   :  { %230 = vmatmul.f32.vlgmr.msra.gmra.mxu3 %v695_v29  ;;  %169 = vmatmul.f32.vlgmr.msra.gmra.mxu0 %v697_v31 }
  0x37   :  { %234 = vmatpush.msrb.mxu0 %v683_v4  ;;  %188 = vmatpush.msra.mxu1 %v97_v33  ;;  %v353_v4 = vld [vmem:[#allocation10 + $0x60] sm:$0xff] }
  0x38   :  { %189 = vmatmul.f32.vlgmr.msra.gmra.mxu1 %v697_v31  ;;  %202 = vmatpush.msra.mxu2 %v116_v50 }
  0x39   :  { %235 = vmatpush.msrb.mxu0 %v685_v5  ;;  %254 = vmatpush.msrb.mxu1 %v143_v34  ;;  %v352_v5 = vld [vmem:[#allocation10 + $0x58] sm:$0xff] }
  0x3a   :  { %203 = vmatpush.msra.mxu2 %v113_v55 }
  0x3b   :  { %236 = vmatpush.msrb.mxu0 %v688_v7  ;;  %255 = vmatpush.msrb.mxu1 %v140_v35 }
  0x3c   :  { %204 = vmatpush.msra.mxu2 %v110_v56 }
  0x3d   :  { %237 = vmatpush.msrb.mxu0 %v691_v9  ;;  %256 = vmatpush.msrb.mxu1 %v137_v36  ;;  %v350_v9 = vld [vmem:[#allocation10 + $0x48] sm:$0xff] }
  0x3e   :  { %205 = vmatpush.msra.mxu2 %v107_v57 }
  0x3f   :  { %238 = vmatpush.msrb.mxu0 %v130_v11  ;;  %257 = vmatpush.msrb.mxu1 %v134_v37  ;;  %v348_v11 = vld [vmem:[#allocation10 + $0x38] sm:$0xff] }
  0x40   :  { %206 = vmatpush.msra.mxu2 %v104_v58 }
  0x41   :  { %239 = vmatpush.msrb.mxu0 %v127_v13  ;;  %258 = vmatpush.msrb.mxu1 %v131_v38  ;;  %v346_v13 = vld [vmem:[#allocation10 + $0x28] sm:$0xff] }
  0x42   :  { %207 = vmatpush.msra.mxu2 %v101_v59 }
  0x43   :  { %240 = vmatpush.msrb.mxu0 %v124_v15  ;;  %259 = vmatpush.msrb.mxu1 %v128_v40 }
  0x44   :  { %208 = vmatpush.msra.mxu2 %v98_v60 }
  0x45   :  { %241 = vmatpush.msrb.mxu0 %v121_v17  ;;  %260 = vmatpush.msrb.mxu1 %v125_v41 }
  0x46   :  { %209 = vmatmul.f32.vlgmr.msra.gmra.mxu2 %v697_v31 }
  0x47   :  { %242 = vmatpush.msrb.mxu0 %v118_v19  ;;  %261 = vmatpush.msrb.mxu1 %v122_v45 }
  0x48   :  { %359 = vmatpush.msrb.mxu2 %v356_v1 }
  0x49   :  { %243 = vmatpush.msrb.mxu0 %v115_v21  ;;  %262 = vmatpush.msrb.mxu1 %v119_v46 }
  0x4a   :  { %360 = vmatpush.msrb.mxu2 %v355_v2 }
  0x4b   :  { %244 = vmatpush.msrb.mxu0 %v112_v23  ;;  %263 = vmatpush.msrb.mxu1 %v116_v50  ;;  %v344_v23 = vld [vmem:[#allocation10 + $0x18] sm:$0xff] }
  0x4c   :  { %361 = vmatpush.msrb.mxu2 %v354_v3 }
  0x4d   :  { %245 = vmatpush.msrb.mxu0 %v109_v25  ;;  %264 = vmatpush.msrb.mxu1 %v113_v55 }
  0x4e   :  { %362 = vmatpush.msrb.mxu2 %v353_v4 }
  0x4f   :  { %246 = vmatpush.msrb.mxu0 %v106_v27  ;;  %265 = vmatpush.msrb.mxu1 %v110_v56 }
  0x50   :  { %363 = vmatpush.msrb.mxu2 %v352_v5 }
  0x51   :  { %247 = vmatpush.msrb.mxu0 %v103_v30  ;;  %266 = vmatpush.msrb.mxu1 %v107_v57  ;;  %v341_v30 = vld [vmem:[#allocation10] sm:$0xff] }
  0x52   :  { %364 = vmatpush.msrb.mxu2 %v351_v6 }
  0x53   :  { %248 = vmatpush.msrb.mxu0 %v100_v32  ;;  %267 = vmatpush.msrb.mxu1 %v104_v58 }
  0x54   :  { %365 = vmatpush.msrb.mxu2 %v350_v9 }
  0x55   :  { %249 = vmatpush.msrb.mxu0 %v97_v33  ;;  %268 = vmatpush.msrb.mxu1 %v101_v59 }
  0x56   :  { %250 = vmatmul.f32.vlgmr.msrb.gmra.mxu0 %v695_v29  ;;  %366 = vmatpush.msrb.mxu2 %v349_v10  ;;  %v451_v10 = vld [vmem:[%s731_s5] ss:$0 sm:$0xff] }
  0x57   :  { %269 = vmatpush.msrb.mxu1 %v98_v60 }
  0x58   :  { %270 = vmatmul.f32.vlgmr.msrb.gmra.mxu1 %v695_v29  ;;  %367 = vmatpush.msrb.mxu2 %v348_v11  ;;  %v342_v29 = vld [vmem:[#allocation10 + $0x8] sm:$0xff] }
  0x5a   :  { %368 = vmatpush.msrb.mxu2 %v347_v12 }
  0x5c   :  { %369 = vmatpush.msrb.mxu2 %v346_v13 }
  0x5e   :  { %370 = vmatpush.msrb.mxu2 %v345_v16 }
  0x60   :  { %371 = vmatpush.msrb.mxu2 %v344_v23 }
  0x62   :  { %372 = vmatpush.msrb.mxu2 %v343_v28 }
  0x64   :  { %373 = vmatpush.msrb.mxu2 %v342_v29 }
  0x66   :  { %374 = vmatpush.msrb.mxu2 %v341_v30 }
  0xb3   :  { %v170_v43 = vpop.f32.mrf.mxu0 }
  0xb4   :  { %v171_v47 = vadd.f32 %v170_v43, %v147_v42 }
  0xb5   :  { %v190_v48 = vpop.f32.mrf.mxu1 }
  0xb6   :  { %v191_v51 = vadd.f32 %v190_v48, %v148_v44 }
  0xb8   :  { %v274_v54 = vmul.f32 %v191_v51, %v171_v47 }
  0xb9   :  { %v231_v49 = vpop.f32.mrf.mxu3 }
  0xba   :  { %v232_v52 = vadd.f32 %v231_v49, %v147_v42  ;;  %275 = vadd.xlane.f32.xlu0 %v274_v54 }
  0xbc   :  { %v280_v53 = vmul.f32 %v232_v52, %v191_v51  ;;  %v149_v51 = vperm.slane %v707_v39, 2 }
  0xbe   :  { %281 = vadd.xlane.f32.xlu1 %v280_v53 }
  0xc9   :  { %v210_v55 = vpop.f32.mrf.mxu2 }
  0xd3   :  { %v251_v61 = vpop.f32.mrf.mxu0 }
  0xd4   :  { %v252_v62 = vadd.f32 %v251_v61, %v148_v44 }
  0xd5   :  { %v271_v58 = vpop.f32.mrf.mxu1 }
  0xd6   :  { %v283_v63 = vmul.f32 %v252_v62, %v232_v52  ;;  %v277_v0 = vmul.f32 %v252_v62, %v171_v47  ;;  %v272_v1 = vadd.f32 %v271_v58, %v149_v51 }
  0xd8   :  { %284 = vadd.xlane.f32.xlu1 %v283_v63  ;;  %278 = vadd.xlane.f32.xlu0 %v277_v0  ;;  %v211_v63 = vadd.f32 %v210_v55, %v149_v51 }
 0x12d   :  { %v276_v8 = vpop.xlane.xlu0 %275 }
 0x131   :  { %v282_v7 = vpop.xlane.xlu1 %281 }
 0x14b   :  { %v285_v14 = vpop.xlane.xlu1 %284  ;;  %v279_v15 = vpop.xlane.xlu0 %278 }
 0x14c   :  { %v309_v17 = vmax.f32 %v282_v7, %v285_v14  ;;  %v286_v18 = vmax.f32 %v276_v8, %v279_v15 }
 0x14e   :  { %v310_v19 = vsub.f32 %v282_v7, %v309_v17  ;;  %v313_v20 = vsub.f32 %v285_v14, %v309_v17  ;;  %v287_v21 = vsub.f32 %v276_v8, %v286_v18  ;;  %v290_v22 = vsub.f32 %v279_v15, %v286_v18 }
 0x14f   :  { %v631_v7 = vmov 8.0  }
 0x150   :  { %v311_v24 = vmul.f32 1.442695, %v310_v19  ;;  %v314_v25 = vmul.f32 1.442695, %v313_v20  ;;  %v288_v26 = vmul.f32 1.442695, %v287_v21 }
 0x151   :  { %v291_v27 = vmul.f32 1.442695, %v290_v22 }
 0x152   :  { %454 = vpow2.f32 %v311_v24 }
 0x153   :  { %456 = vpow2.f32 %v314_v25 }
 0x154   :  { %458 = vpow2.f32 %v288_v26 }
 0x155   :  { %460 = vpow2.f32 %v291_v27 }
 0x158   :  { %v455_v31 = vpop.eup %454 }
 0x159   :  { %v457_v32 = vpop.eup %456 }
 0x15a   :  { %v459_v33 = vpop.eup %458  ;;  %v316_v34 = vadd.f32 %v457_v32, %v455_v31 }
 0x15b   :  { %v461_v35 = vpop.eup %460 }
 0x15c   :  { %462 = vrcp.f32 %v316_v34  ;;  %v293_v36 = vadd.f32 %v461_v35, %v459_v33  ;;  %v328_v43 = vand.u32 2147483648, %v316_v34  ;;  %v326_v46 = vand.u32 2147483647, %v316_v34 }
 0x15d   :  { %vm322_vm1 = vweird.f32 %v316_v34 }
 0x15e   :  { %464 = vrcp.f32 %v293_v36  ;;  %v305_v47 = vand.u32 2147483648, %v293_v36  ;;  %v303_v49 = vand.u32 2147483647, %v293_v36  ;;  %v329_v52 = vor.u32 1.1754944e-38, %v328_v43 }
 0x15f   :  { %vm299_vm4 = vweird.f32 %v293_v36  ;;  %vm327_vm5 = vcmp.eq.f32.partialorder %v326_v46, 8.507059e+37  ;;  %466 = vrcp.f32 %v631_v7 }
 0x160   :  { %v306_v56 = vor.u32 1.1754944e-38, %v305_v47  ;;  %vm304_vm7 = vcmp.eq.f32.partialorder %v303_v49, 8.507059e+37 }
 0x162   :  { %v463_v37 = vpop.eup %462 }
 0x163   :  { %v318_v38 = vmul.f32 %v463_v37, %v316_v34  ;;  %vm323_vm0 = vweird.f32 %v463_v37 }
 0x164   :  { %v465_v40 = vpop.eup %464  ;;  %vm324_vm3 = vmor %vm322_vm1, %vm323_vm0 }
 0x165   :  { %v295_v41 = vmul.f32 %v465_v40, %v293_v36  ;;  %v319_v42 = vsub.f32 1.0, %v318_v38  ;;  %vm300_vm2 = vweird.f32 %v465_v40  ;;  %v467_v8 = vpop.eup %466 }
 0x166   :  { %vm301_vm6 = vmor %vm299_vm4, %vm300_vm2  ;;  %v386_v9 = vmul.f32 8.0, %v467_v8  ;;  %vm390_vm8 = vweird.f32 %v467_v8 }
 0x167   :  { %v296_v44 = vsub.f32 1.0, %v295_v41  ;;  %v320_v45 = vmul.f32 %v463_v37, %v319_v42  ;;  %v452_v41 = vld [vmem:[%s731_s5 + $0x1] ss:$0 sm:$0xff] }
 0x168   :  { %v387_v12 = vsub.f32 1.0, %v386_v9 }
 0x169   :  { %v297_v48 = vmul.f32 %v465_v40, %v296_v44  ;;  %v321_v50 = vadd.f32 %v463_v37, %v320_v45  ;;  %v453_v44 = vld [vmem:[%s731_s5 + $0x2] ss:$0 sm:$0xff] }
 0x16a   :  { %v388_v15 = vmul.f32 %v467_v8, %v387_v12 }
 0x16b   :  { %v298_v53 = vadd.f32 %v465_v40, %v297_v48  ;;  %v325_v54 = vsel %vm324_vm3, %v463_v37, %v321_v50 }
 0x16c   :  { %v330_v57 = vsel %vm327_vm5, %v329_v52, %v325_v54  ;;  %v389_v18 = vadd.f32 %v467_v8, %v388_v15 }
 0x16d   :  { %v302_v59 = vsel %vm301_vm6, %v465_v40, %v298_v53  ;;  %v333_v60 = vmul.f32 %v455_v31, %v330_v57  ;;  %v336_v61 = vmul.f32 %v457_v32, %v330_v57 }
 0x16e   :  { %v307_v62 = vsel %vm304_vm7, %v306_v56, %v302_v59  ;;  %v391_v21 = vsel %vm390_vm8, %v467_v8, %v389_v18 }
 0x16f   :  { %v332_v0 = vmul.f32 %v459_v33, %v307_v62  ;;  %v335_v39 = vmul.f32 %v461_v35, %v307_v62 }
 0x171   :  { %v334_v2 = vadd.f32 %v333_v60, %v332_v0  ;;  %v337_v3 = vadd.f32 %v336_v61, %v335_v39 }
 0x173   :  { %v338_v4 = vmul.f32 %v334_v2, %v211_v63  ;;  %v339_v5 = vmul.f32 %v337_v3, %v272_v1 }
 0x175   :  { %v340_v6 = vadd.f32 %v339_v5, %v338_v4 }
 0x177   :  { %375 = vmatmul.f32.vlgmr.msrb.gmra.mxu2 %v340_v6 }
 0x1fa   :  { %v376_v11 = vpop.f32.mrf.mxu2 }
 0x1fb   :  { %v377_v13 = vadd.f32 %v451_v10, %v376_v11 }
 0x1fd   :  { %v379_v14 = vrot.slane %v377_v13, 4 }
 0x1ff   :  { %v380_v16 = vadd.f32 %v379_v14, %v377_v13 }
 0x201   :  { %v381_v17 = vrot.slane %v380_v16, 2 }
 0x203   :  { %v382_v19 = vadd.f32 %v381_v17, %v380_v16 }
 0x205   :  { %v383_v20 = vrot.slane %v382_v19, 1 }
 0x207   :  { %v384_v22 = vadd.f32 %v383_v20, %v382_v19 }
 0x209   :  { %v392_v23 = vmul.f32 %v391_v21, %v384_v22 }
 0x20b   :  { %v393_v24 = vsub.f32 %v377_v13, %v392_v23 }
 0x20d   :  { %v394_v25 = vmul.f32 %v393_v24, %v393_v24 }
 0x20f   :  { %v395_v26 = vrot.slane %v394_v25, 4 }
 0x211   :  { %v396_v27 = vadd.f32 %v395_v26, %v394_v25 }
 0x213   :  { %v397_v28 = vrot.slane %v396_v27, 2 }
 0x215   :  { %v398_v29 = vadd.f32 %v397_v28, %v396_v27 }
 0x217   :  { %v399_v30 = vrot.slane %v398_v29, 1 }
 0x219   :  { %v400_v31 = vadd.f32 %v399_v30, %v398_v29 }
 0x21b   :  { %v401_v32 = vmul.f32 %v400_v31, %v391_v21 }
 0x21d   :  { %v402_v33 = vadd.f32 1e-05, %v401_v32 }
 0x21f   :  { %468 = vrsqrt.f32 %v402_v33  ;;  %vm409_vm10 = vweird.f32 %v402_v33 }
 0x225   :  { %v469_v34 = vpop.eup %468 }
 0x226   :  { %v404_v35 = vmul.f32 %v469_v34, %v402_v33  ;;  %vm410_vm9 = vweird.f32 %v469_v34 }
 0x227   :  { %vm411_vm11 = vmor %vm409_vm10, %vm410_vm9 }
 0x228   :  { %v405_v36 = vmul.f32 %v469_v34, %v404_v35 }
 0x22a   :  { %v406_v37 = vmul.f32 0.5, %v405_v36 }
 0x22c   :  { %v407_v38 = vsub.f32 1.5, %v406_v37 }
 0x22e   :  { %v408_v40 = vmul.f32 %v469_v34, %v407_v38 }
 0x230   :  { %v412_v42 = vsel %vm411_vm11, %v469_v34, %v408_v40 }
 0x231   :  { %v414_v43 = vmul.f32 %v412_v42, %v393_v24 }
 0x233   :  { %v416_v45 = vmul.f32 %v452_v41, %v414_v43 }
 0x235   :  { %v419_v46 = vadd.f32 %v453_v44, %v416_v45 }
 0x237   :  { %420 = vst [vmem:[#allocation11] sm:$0xff] %v419_v46 }
 0x238   :  { %431 = dma.vmem_to_hbm [thread:$0]  %s427_s28, 128, %s429_s7, [#allocation4]  }
 0x239   :  { %620 = dma.done.wait [#allocation4], 128  }
 0x23a   :  { %621 = vsyncadd [#allocation4], 4294967168 }
 0x23b   :  { %436 = vsyncpa [#allocation3], 1 }
 0x23c   :  { %437 = vsyncpa [#allocation6], 1 }
 0x23d   :  { %438 = vsyncpa [#allocation9], 1 }
 0x23e   :  { %439 = vsyncpa [#allocation4], 1 }

</bundles_post_ra>
